<compile_context>
chip_gen: v6e
topology: v6e:2x2x1
jax: 0.10.0
libtpu: 0.0.40
codegen_flags: <defaults>
</compile_context>

<pallas_src>
import functools

import jax
import jax.numpy as jnp
from jax import lax
from jax.experimental import pallas as pl
from jax.experimental.pallas import tpu as pltpu


# Contract the last dim of both operands: a @ b.T without a materialized
# transpose (same dimension numbers the official flash-attention kernel uses).
_TRANS_B = (((1,), (1,)), ((), ()))


# ---------------------------------------------------------------------------
# Kernel
#   refs = [x_0, ..., x_{L-1},          # (b, d_i) f32, resident (full block)
#           t_row (1, b) int32,         # resident
#           t_col (row_tile, 1) int32,  # per-row-tile block
#           out (1, 1) f32,             # written once on the last step
#           sum_scratch (1,1) f32, cnt_scratch (1,1) f32]
# ---------------------------------------------------------------------------
def jrs_kernel(*refs, layer_num, row_tile, kernel_muls, kernel_nums, fix_sigmas):
    x_refs = refs[:layer_num]
    t_row_ref = refs[layer_num]          # (1, b) int32
    t_col_ref = refs[layer_num + 1]      # (row_tile, 1) int32
    out_ref = refs[layer_num + 2]        # (1, 1) f32
    sum_ref = refs[layer_num + 3]        # (1, 1) f32 running masked sum
    cnt_ref = refs[layer_num + 4]        # (1, 1) f32 running pair count

    r = pl.program_id(0)
    n_tiles = pl.num_programs(0)
    row_off = pl.multiple_of(r * row_tile, row_tile)
    b = t_row_ref.shape[1]

    @pl.when(r == 0)
    def _init():
        sum_ref[...] = jnp.zeros_like(sum_ref)
        cnt_ref[...] = jnp.zeros_like(cnt_ref)

    joint = None
    for i in range(layer_num):
        x_ref = x_refs[i]
        d = x_ref.shape[1]
        x_full = x_ref[...]                            # (b, d), resident in VMEM
        x_rows = x_ref[pl.ds(row_off, row_tile), :]    # (row_tile, d) row slab

        # --- row tile of the pairwise squared-distance matrix -------------
        # gram = x_rows @ x_full.T on the MXU (contracted-RHS, no transpose).
        gram = lax.dot_general(x_rows, x_full, _TRANS_B,
                               preferred_element_type=jnp.float32)   # (row_tile, b)
        sq_rows = jnp.sum(x_rows * x_rows, axis=1, keepdims=True)    # (row_tile, 1)
        # Lane-oriented squared norms of ALL rows via a tiny 1-row ones-matmul
        # (replaces the old transposed-x square + cross-sublane reduce).
        y_full = x_full * x_full                                      # (b, d)
        ones_row = jnp.ones((1, d), jnp.float32)
        sq_cols = lax.dot_general(ones_row, y_full, _TRANS_B,
                                  preferred_element_type=jnp.float32)  # (1, b)
        dist = sq_rows + sq_cols - 2.0 * gram                          # (row_tile, b)
        # NOTE: kernel matmuls use default MXU precision; the pure-JAX
        # reference uses Precision.HIGHEST — matches within rtol=1e-4 here.

        kernel_mul = float(kernel_muls[i])
        kernel_num = int(kernel_nums[i])
        fix_sigma = fix_sigmas[i]

        if fix_sigma:  # static branch, truthiness matches PyTorch `if fix_sigma:`
            # bandwidth = fix_sigma / mul**(num//2)  -> fold into -1/bandwidth.
            neg_inv_bw = -(kernel_mul ** (kernel_num // 2)) / float(fix_sigma)
        else:
            # Closed-form sum of the FULL (b, b) distance matrix from O(b*d)
            # row statistics (cheap VPU reduces recomputed per tile; no full
            # (b,b) reduce serializing the exps):
            #   sum(dist) = 2*b*sum_i ||x_i||^2 - 2*||sum_i x_i||^2
            s_norm = jnp.sum(y_full)                                   # scalar
            col_sum = jnp.sum(x_full, axis=0, keepdims=True)           # (1, d)
            total = 2.0 * b * s_norm - 2.0 * jnp.sum(col_sum * col_sum)
            bandwidth = total / float(b * b - b)
            bandwidth = bandwidth / (kernel_mul ** (kernel_num // 2))
            # NOTE: unguarded divide-by-zero (all rows identical) -> NaN,
            # same as the PyTorch module.
            neg_inv_bw = -1.0 / bandwidth

        # Multi-bandwidth Gaussian kernel: one scalar factor per k, folded
        # into the exp argument (no full-matrix divides).
        kern = None
        for k in range(kernel_num):
            scale_k = neg_inv_bw * (kernel_mul ** (-k))
            term = jnp.exp(dist * scale_k)
            kern = term if kern is None else kern + term
        kern = kern * (1.0 / kernel_num)
        joint = kern if joint is None else joint * kern

    # Different-class mask for this row tile and running masked sum / count
    # (== masked_select(...).mean() once finalized).
    t_row = t_row_ref[...]                       # (1, b)
    t_col = t_col_ref[...]                       # (row_tile, 1)
    diff_class = t_row != t_col                  # (row_tile, b) bool
    sum_ref[...] += jnp.sum(jnp.where(diff_class, joint, 0.0), keepdims=True)
    cnt_ref[...] += jnp.sum(diff_class.astype(jnp.float32), keepdims=True)

    @pl.when(r == n_tiles - 1)
    def _finalize():
        # NOTE: all targets equal -> cnt == 0 -> NaN, same as PyTorch.
        out_ref[...] = sum_ref[...] / cnt_ref[...]


# ---------------------------------------------------------------------------
# Wrapper
# ---------------------------------------------------------------------------
def _pick_row_tile(b):
    # Single tile for small batches; otherwise 512/256/128-row tiles of the
    # pair matrix (multiple of the 8-sublane granule, keeps VMEM bounded).
    if b <= 512:
        return b
    for tb in (512, 256, 128):
        if b % tb == 0:
            return tb
    return b  # TODO(synk): pad ragged b to a multiple of 128 for production.


def jrs_forward(source_list, target, *, kernel_muls, kernel_nums, fix_sigmas):
    layer_num = len(source_list)
    b = source_list[0].shape[0]
    row_tile = _pick_row_tile(b)
    n_tiles = b // row_tile

    # If features arrive as bf16 upstream, they could be fed straight to the
    # MXU; here inputs are f32, so keep f32 (see precision note in-kernel).
    xs = [x.astype(jnp.float32) for x in source_list]
    t = target.astype(jnp.int32)
    t_row = t.reshape(1, b)
    t_col = t.reshape(b, 1)

    in_specs = [pl.BlockSpec((b, x.shape[1]), lambda r: (0, 0)) for x in xs]
    in_specs.append(pl.BlockSpec((1, b), lambda r: (0, 0)))            # t_row
    in_specs.append(pl.BlockSpec((row_tile, 1), lambda r: (r, 0)))     # t_col

    kernel = functools.partial(
        jrs_kernel,
        layer_num=layer_num,
        row_tile=row_tile,
        kernel_muls=tuple(kernel_muls),
        kernel_nums=tuple(kernel_nums),
        fix_sigmas=tuple(fix_sigmas),
    )

    # Explicit scoped-VMEM budget: resident sources + ~6 live (row_tile, b)
    # f32 intermediates per step, with headroom (defaults are only 16/32 MiB).
    est = (sum(b * x.shape[1] * 4 for x in xs)
           + 6 * row_tile * b * 4
           + 8 * b * 4)
    vmem_limit = int(min(96 * 1024 * 1024, max(32 * 1024 * 1024, 2 * est)))

    out = pl.pallas_call(
        kernel,
        out_shape=jax.ShapeDtypeStruct((1, 1), jnp.float32),
        grid_spec=pltpu.PrefetchScalarGridSpec(
            num_scalar_prefetch=0,
            grid=(n_tiles,),
            in_specs=in_specs,
            out_specs=pl.BlockSpec((1, 1), lambda r: (0, 0)),
            scratch_shapes=[pltpu.VMEM((1, 1), jnp.float32),   # running sum
                            pltpu.VMEM((1, 1), jnp.float32)],  # running count
        ),
        compiler_params=pltpu.CompilerParams(
            dimension_semantics=("arbitrary",),   # reduction axis (accumulators)
            vmem_limit_bytes=vmem_limit),
    )(*xs, t_row, t_col)
    return out[0, 0]


# ---------------------------------------------------------------------------
# Pure-JAX reference (mirrors the PyTorch module)
# ---------------------------------------------------------------------------
def reference(source_list, target, kernel_muls, kernel_nums, fix_sigmas):
    b = source_list[0].shape[0]
    joint = None
    for x, mul, num, sig in zip(source_list, kernel_muls, kernel_nums, fix_sigmas):
        xx = jnp.sum(x * x, axis=1, keepdims=True)                    # (b, 1)
        gram = jnp.dot(x, x.T, precision=lax.Precision.HIGHEST)
        dist = xx + xx.T - 2.0 * gram
        if sig:
            bw = jnp.float32(sig)
        else:
            bw = jnp.sum(dist) / (b * b - b)
        bw = bw / (mul ** (num // 2))
        vals = [jnp.exp(-dist / (bw * mul ** k)) for k in range(num)]
        kern = sum(vals) / num
        joint = kern if joint is None else joint * kern
    same = target[None, :] == target[:, None]
    neg = ~same
    return jnp.sum(jnp.where(neg, joint, 0.0)) / jnp.sum(neg.astype(jnp.float32))


if __name__ == "__main__":
    # Module hyper-params: 2 feature layers, one data-driven bandwidth and one
    # fixed sigma (exercises both branches).
    kernel_muls = [2.0, 2.0]
    kernel_nums = [5, 3]
    fix_sigmas = [None, 1.0]

    b = 8
    dims = [32, 16]

    key = jax.random.PRNGKey(0)
    k0, k1 = jax.random.split(key, 2)
    source_list = [
        jax.random.normal(k0, (b, dims[0]), jnp.float32),
        jax.random.normal(k1, (b, dims[1]), jnp.float32),
    ]
    # Deterministic, guaranteed-mixed class labels (so the masked mean is finite).
    target = jnp.array([0, 1, 0, 2, 1, 3, 2, 0], dtype=jnp.int32)

    loss = jrs_forward(
        source_list, target,
        kernel_muls=kernel_muls, kernel_nums=kernel_nums, fix_sigmas=fix_sigmas)
    loss = jax.block_until_ready(loss)

    ref = reference(source_list, target, kernel_muls, kernel_nums, fix_sigmas)
    assert jnp.allclose(loss, ref, rtol=1e-4, atol=1e-5), (loss, ref)

    print("KERNEL_OK")
</pallas_src>

<mosaic_0001>
module attributes {stable_mosaic.version = 11 : i64} {
  func.func @jrs_kernel(%arg0: i32, %arg1: memref<8x32xf32, #tpu.memory_space<vmem>>, %arg2: memref<8x16xf32, #tpu.memory_space<vmem>>, %arg3: memref<1x8xi32, #tpu.memory_space<vmem>>, %arg4: memref<8x1xi32, #tpu.memory_space<vmem>>, %arg5: memref<1x1xf32, #tpu.memory_space<vmem>>, %arg6: memref<1x1xf32, #tpu.memory_space<vmem>>, %arg7: memref<1x1xf32, #tpu.memory_space<vmem>>) attributes {dimension_semantics = [#tpu.dimension_semantics<arbitrary>], iteration_bounds = array<i64: 1>, scalar_prefetch = 0 : i64, scratch_operands = 2 : i64, tpu.core_type = #tpu.core_type<tc>, window_params = [{pipeline_mode = #tpu.pipeline_mode<synchronous>, transform_indices = @transform_0, window_bounds = array<i64: 8, 32>}, {pipeline_mode = #tpu.pipeline_mode<synchronous>, transform_indices = @transform_1, window_bounds = array<i64: 8, 16>}, {pipeline_mode = #tpu.pipeline_mode<synchronous>, transform_indices = @transform_2, window_bounds = array<i64: 1, 8>}, {transform_indices = @transform_3, window_bounds = array<i64: 8, 1>}, {pipeline_mode = #tpu.pipeline_mode<synchronous>, transform_indices = @transform_4, window_bounds = array<i64: 1, 1>}]} {
    %c8_i32 = arith.constant 8 : i32
    %0 = arith.muli %arg0, %c8_i32 : i32
    %1 = tpu.assume_multiple %0, 8 : i32
    %c0_i32 = arith.constant 0 : i32
    %2 = arith.cmpi eq, %arg0, %c0_i32 : i32
    %3 = arith.extui %2 : i1 to i32
    %c0_i32_0 = arith.constant 0 : i32
    %4 = arith.cmpi ne, %3, %c0_i32_0 : i32
    scf.if %4 {
      %cst_50 = arith.constant 0.000000e+00 : f32
      %122 = vector.broadcast %cst_50 : f32 to vector<1x1xf32>
      %c0_51 = arith.constant 0 : index
      %c0_52 = arith.constant 0 : index
      %123 = vector.load %arg6[%c0_51, %c0_52] : memref<1x1xf32, #tpu.memory_space<vmem>>, vector<1x1xf32>
      tpu.vector_store %arg6[%c0_51, %c0_52], %122 {strides = array<i32>} : memref<1x1xf32, #tpu.memory_space<vmem>>, vector<1x1xf32>,
      %cst_53 = arith.constant 0.000000e+00 : f32
      %124 = vector.broadcast %cst_53 : f32 to vector<1x1xf32>
      %c0_54 = arith.constant 0 : index
      %c0_55 = arith.constant 0 : index
      %125 = vector.load %arg7[%c0_54, %c0_55] : memref<1x1xf32, #tpu.memory_space<vmem>>, vector<1x1xf32>
      tpu.vector_store %arg7[%c0_54, %c0_55], %124 {strides = array<i32>} : memref<1x1xf32, #tpu.memory_space<vmem>>, vector<1x1xf32>,
    } else {
    }
    %c0 = arith.constant 0 : index
    %c0_1 = arith.constant 0 : index
    %5 = vector.load %arg1[%c0, %c0_1] : memref<8x32xf32, #tpu.memory_space<vmem>>, vector<8x32xf32>
    %6 = arith.index_cast %1 : i32 to index
    %c0_2 = arith.constant 0 : index
    %7 = vector.load %arg1[%6, %c0_2] : memref<8x32xf32, #tpu.memory_space<vmem>>, vector<8x32xf32>
    %cst = arith.constant dense<0.000000e+00> : vector<8x8xf32>
    %8 = tpu.matmul %7, %5, %cst {dimension_numbers = #tpu.dot_dimension_numbers<[1], [1], [0], [0], [0, 0, 1, 0], [], []>} : vector<8x32xf32>, vector<8x32xf32>, vector<8x8xf32> -> vector<8x8xf32>
    %9 = arith.mulf %7, %7 : vector<8x32xf32>
    %cst_3 = arith.constant dense<0.000000e+00> : vector<8xf32>
    %10 = vector.multi_reduction <add>, %9, %cst_3 [1] : vector<8x32xf32> to vector<8xf32>
    %11 = vector.shape_cast %10 : vector<8xf32> to vector<8x1xf32>
    %12 = arith.mulf %5, %5 : vector<8x32xf32>
    %cst_4 = arith.constant 1.000000e+00 : f32
    %13 = vector.broadcast %cst_4 : f32 to vector<1x32xf32>
    %cst_5 = arith.constant dense<0.000000e+00> : vector<1x8xf32>
    %14 = tpu.matmul %13, %12, %cst_5 {dimension_numbers = #tpu.dot_dimension_numbers<[1], [1], [0], [0], [0, 0, 1, 0], [], []>} : vector<1x32xf32>, vector<8x32xf32>, vector<1x8xf32> -> vector<1x8xf32>
    %15 = vector.broadcast %11 : vector<8x1xf32> to vector<8x8xf32>
    %16 = vector.broadcast %14 : vector<1x8xf32> to vector<8x8xf32>
    %17 = arith.addf %15, %16 : vector<8x8xf32>
    %cst_6 = arith.constant 2.000000e+00 : f32
    %18 = vector.broadcast %cst_6 : f32 to vector<8x8xf32>
    %19 = arith.mulf %18, %8 : vector<8x8xf32>
    %20 = arith.subf %17, %19 : vector<8x8xf32>
    %21 = vector.shape_cast %12 : vector<8x32xf32> to vector<1x8x32xf32>
    %cst_7 = arith.constant dense<0.000000e+00> : vector<1xf32>
    %22 = vector.multi_reduction <add>, %21, %cst_7 [1, 2] : vector<1x8x32xf32> to vector<1xf32>
    %23 = vector.shape_cast %22 : vector<1xf32> to vector<1x1x1xf32>
    %24 = vector.extract %23[0, 0, 0] : f32 from vector<1x1x1xf32>
    %cst_8 = arith.constant dense<0.000000e+00> : vector<32xf32>
    %25 = vector.multi_reduction <add>, %5, %cst_8 [0] : vector<8x32xf32> to vector<32xf32>
    %26 = vector.shape_cast %25 : vector<32xf32> to vector<1x32xf32>
    %cst_9 = arith.constant 1.600000e+01 : f32
    %27 = arith.mulf %cst_9, %24 : f32
    %28 = arith.mulf %26, %26 : vector<1x32xf32>
    %29 = vector.shape_cast %28 : vector<1x32xf32> to vector<1x1x32xf32>
    %cst_10 = arith.constant dense<0.000000e+00> : vector<1xf32>
    %30 = vector.multi_reduction <add>, %29, %cst_10 [1, 2] : vector<1x1x32xf32> to vector<1xf32>
    %31 = vector.shape_cast %30 : vector<1xf32> to vector<1x1x1xf32>
    %32 = vector.extract %31[0, 0, 0] : f32 from vector<1x1x1xf32>
    %cst_11 = arith.constant 2.000000e+00 : f32
    %33 = arith.mulf %cst_11, %32 : f32
    %34 = arith.subf %27, %33 : f32
    %cst_12 = arith.constant 5.600000e+01 : f32
    %35 = arith.divf %34, %cst_12 : f32
    %cst_13 = arith.constant 4.000000e+00 : f32
    %36 = arith.divf %35, %cst_13 : f32
    %cst_14 = arith.constant -1.000000e+00 : f32
    %37 = arith.divf %cst_14, %36 : f32
    %cst_15 = arith.constant 1.000000e+00 : f32
    %38 = arith.mulf %37, %cst_15 : f32
    %39 = vector.broadcast %38 : f32 to vector<8x8xf32>
    %40 = arith.mulf %20, %39 : vector<8x8xf32>
    %41 = math.exp %40 : vector<8x8xf32>
    %cst_16 = arith.constant 5.000000e-01 : f32
    %42 = arith.mulf %37, %cst_16 : f32
    %43 = vector.broadcast %42 : f32 to vector<8x8xf32>
    %44 = arith.mulf %20, %43 : vector<8x8xf32>
    %45 = math.exp %44 : vector<8x8xf32>
    %46 = arith.addf %41, %45 : vector<8x8xf32>
    %cst_17 = arith.constant 2.500000e-01 : f32
    %47 = arith.mulf %37, %cst_17 : f32
    %48 = vector.broadcast %47 : f32 to vector<8x8xf32>
    %49 = arith.mulf %20, %48 : vector<8x8xf32>
    %50 = math.exp %49 : vector<8x8xf32>
    %51 = arith.addf %46, %50 : vector<8x8xf32>
    %cst_18 = arith.constant 1.250000e-01 : f32
    %52 = arith.mulf %37, %cst_18 : f32
    %53 = vector.broadcast %52 : f32 to vector<8x8xf32>
    %54 = arith.mulf %20, %53 : vector<8x8xf32>
    %55 = math.exp %54 : vector<8x8xf32>
    %56 = arith.addf %51, %55 : vector<8x8xf32>
    %cst_19 = arith.constant 6.250000e-02 : f32
    %57 = arith.mulf %37, %cst_19 : f32
    %58 = vector.broadcast %57 : f32 to vector<8x8xf32>
    %59 = arith.mulf %20, %58 : vector<8x8xf32>
    %60 = math.exp %59 : vector<8x8xf32>
    %61 = arith.addf %56, %60 : vector<8x8xf32>
    %cst_20 = arith.constant 2.000000e-01 : f32
    %62 = vector.broadcast %cst_20 : f32 to vector<8x8xf32>
    %63 = arith.mulf %61, %62 : vector<8x8xf32>
    %c0_21 = arith.constant 0 : index
    %c0_22 = arith.constant 0 : index
    %64 = vector.load %arg2[%c0_21, %c0_22] : memref<8x16xf32, #tpu.memory_space<vmem>>, vector<8x16xf32>
    %65 = arith.index_cast %1 : i32 to index
    %c0_23 = arith.constant 0 : index
    %66 = vector.load %arg2[%65, %c0_23] : memref<8x16xf32, #tpu.memory_space<vmem>>, vector<8x16xf32>
    %cst_24 = arith.constant dense<0.000000e+00> : vector<8x8xf32>
    %67 = tpu.matmul %66, %64, %cst_24 {dimension_numbers = #tpu.dot_dimension_numbers<[1], [1], [0], [0], [0, 0, 1, 0], [], []>} : vector<8x16xf32>, vector<8x16xf32>, vector<8x8xf32> -> vector<8x8xf32>
    %68 = arith.mulf %66, %66 : vector<8x16xf32>
    %cst_25 = arith.constant dense<0.000000e+00> : vector<8xf32>
    %69 = vector.multi_reduction <add>, %68, %cst_25 [1] : vector<8x16xf32> to vector<8xf32>
    %70 = vector.shape_cast %69 : vector<8xf32> to vector<8x1xf32>
    %71 = arith.mulf %64, %64 : vector<8x16xf32>
    %cst_26 = arith.constant 1.000000e+00 : f32
    %72 = vector.broadcast %cst_26 : f32 to vector<1x16xf32>
    %cst_27 = arith.constant dense<0.000000e+00> : vector<1x8xf32>
    %73 = tpu.matmul %72, %71, %cst_27 {dimension_numbers = #tpu.dot_dimension_numbers<[1], [1], [0], [0], [0, 0, 1, 0], [], []>} : vector<1x16xf32>, vector<8x16xf32>, vector<1x8xf32> -> vector<1x8xf32>
    %74 = vector.broadcast %70 : vector<8x1xf32> to vector<8x8xf32>
    %75 = vector.broadcast %73 : vector<1x8xf32> to vector<8x8xf32>
    %76 = arith.addf %74, %75 : vector<8x8xf32>
    %cst_28 = arith.constant 2.000000e+00 : f32
    %77 = vector.broadcast %cst_28 : f32 to vector<8x8xf32>
    %78 = arith.mulf %77, %67 : vector<8x8xf32>
    %79 = arith.subf %76, %78 : vector<8x8xf32>
    %cst_29 = arith.constant -2.000000e+00 : f32
    %80 = vector.broadcast %cst_29 : f32 to vector<8x8xf32>
    %81 = arith.mulf %79, %80 : vector<8x8xf32>
    %82 = math.exp %81 : vector<8x8xf32>
    %cst_30 = arith.constant -1.000000e+00 : f32
    %83 = vector.broadcast %cst_30 : f32 to vector<8x8xf32>
    %84 = arith.mulf %79, %83 : vector<8x8xf32>
    %85 = math.exp %84 : vector<8x8xf32>
    %86 = arith.addf %82, %85 : vector<8x8xf32>
    %cst_31 = arith.constant -5.000000e-01 : f32
    %87 = vector.broadcast %cst_31 : f32 to vector<8x8xf32>
    %88 = arith.mulf %79, %87 : vector<8x8xf32>
    %89 = math.exp %88 : vector<8x8xf32>
    %90 = arith.addf %86, %89 : vector<8x8xf32>
    %cst_32 = arith.constant 0.333333343 : f32
    %91 = vector.broadcast %cst_32 : f32 to vector<8x8xf32>
    %92 = arith.mulf %90, %91 : vector<8x8xf32>
    %93 = arith.mulf %63, %92 : vector<8x8xf32>
    %c0_33 = arith.constant 0 : index
    %c0_34 = arith.constant 0 : index
    %94 = vector.load %arg3[%c0_33, %c0_34] : memref<1x8xi32, #tpu.memory_space<vmem>>, vector<1x8xi32>
    %c0_35 = arith.constant 0 : index
    %c0_36 = arith.constant 0 : index
    %95 = vector.load %arg4[%c0_35, %c0_36] : memref<8x1xi32, #tpu.memory_space<vmem>>, vector<8x1xi32>
    %96 = vector.broadcast %94 : vector<1x8xi32> to vector<8x8xi32>
    %97 = vector.broadcast %95 : vector<8x1xi32> to vector<8x8xi32>
    %98 = arith.cmpi ne, %96, %97 : vector<8x8xi32>
    %c0_37 = arith.constant 0 : index
    %c0_38 = arith.constant 0 : index
    %99 = vector.load %arg6[%c0_37, %c0_38] : memref<1x1xf32, #tpu.memory_space<vmem>>, vector<1x1xf32>
    %cst_39 = arith.constant 0.000000e+00 : f32
    %100 = vector.broadcast %cst_39 : f32 to vector<8x8xf32>
    %101 = arith.select %98, %93, %100 : vector<8x8xi1>, vector<8x8xf32>
    %102 = vector.shape_cast %101 : vector<8x8xf32> to vector<1x8x8xf32>
    %cst_40 = arith.constant dense<0.000000e+00> : vector<1xf32>
    %103 = vector.multi_reduction <add>, %102, %cst_40 [1, 2] : vector<1x8x8xf32> to vector<1xf32>
    %104 = vector.shape_cast %103 : vector<1xf32> to vector<1x1x1xf32>
    %105 = vector.extract %104[0, 0, 0] : f32 from vector<1x1x1xf32>
    %106 = vector.broadcast %105 : f32 to vector<1x1xf32>
    %107 = arith.addf %99, %106 : vector<1x1xf32>
    %c0_41 = arith.constant 0 : index
    %c0_42 = arith.constant 0 : index
    %108 = vector.load %arg6[%c0_41, %c0_42] : memref<1x1xf32, #tpu.memory_space<vmem>>, vector<1x1xf32>
    tpu.vector_store %arg6[%c0_41, %c0_42], %107 {strides = array<i32>} : memref<1x1xf32, #tpu.memory_space<vmem>>, vector<1x1xf32>,
    %c0_43 = arith.constant 0 : index
    %c0_44 = arith.constant 0 : index
    %109 = vector.load %arg7[%c0_43, %c0_44] : memref<1x1xf32, #tpu.memory_space<vmem>>, vector<1x1xf32>
    %110 = arith.extui %98 : vector<8x8xi1> to vector<8x8xi32>
    %111 = arith.sitofp %110 : vector<8x8xi32> to vector<8x8xf32>
    %112 = vector.shape_cast %111 : vector<8x8xf32> to vector<1x8x8xf32>
    %cst_45 = arith.constant dense<0.000000e+00> : vector<1xf32>
    %113 = vector.multi_reduction <add>, %112, %cst_45 [1, 2] : vector<1x8x8xf32> to vector<1xf32>
    %114 = vector.shape_cast %113 : vector<1xf32> to vector<1x1x1xf32>
    %115 = vector.extract %114[0, 0, 0] : f32 from vector<1x1x1xf32>
    %116 = vector.broadcast %115 : f32 to vector<1x1xf32>
    %117 = arith.addf %109, %116 : vector<1x1xf32>
    %c0_46 = arith.constant 0 : index
    %c0_47 = arith.constant 0 : index
    %118 = vector.load %arg7[%c0_46, %c0_47] : memref<1x1xf32, #tpu.memory_space<vmem>>, vector<1x1xf32>
    tpu.vector_store %arg7[%c0_46, %c0_47], %117 {strides = array<i32>} : memref<1x1xf32, #tpu.memory_space<vmem>>, vector<1x1xf32>,
    %c0_i32_48 = arith.constant 0 : i32
    %119 = arith.cmpi eq, %arg0, %c0_i32_48 : i32
    %120 = arith.extui %119 : i1 to i32
    %c0_i32_49 = arith.constant 0 : i32
    %121 = arith.cmpi ne, %120, %c0_i32_49 : i32
    scf.if %121 {
      %c0_50 = arith.constant 0 : index
      %c0_51 = arith.constant 0 : index
      %122 = vector.load %arg6[%c0_50, %c0_51] : memref<1x1xf32, #tpu.memory_space<vmem>>, vector<1x1xf32>
      %c0_52 = arith.constant 0 : index
      %c0_53 = arith.constant 0 : index
      %123 = vector.load %arg7[%c0_52, %c0_53] : memref<1x1xf32, #tpu.memory_space<vmem>>, vector<1x1xf32>
      %124 = arith.divf %122, %123 : vector<1x1xf32>
      %c0_54 = arith.constant 0 : index
      %c0_55 = arith.constant 0 : index
      %125 = vector.load %arg5[%c0_54, %c0_55] : memref<1x1xf32, #tpu.memory_space<vmem>>, vector<1x1xf32>
      tpu.vector_store %arg5[%c0_54, %c0_55], %124 {strides = array<i32>} : memref<1x1xf32, #tpu.memory_space<vmem>>, vector<1x1xf32>,
    } else {
    }
    return
  }
  func.func @transform_0(%arg0: i32) -> (i32, i32) {
    %c0_i32 = arith.constant 0 : i32
    %c0_i32_0 = arith.constant 0 : i32
    %c0_i32_1 = arith.constant 0 : i32
    return %c0_i32, %c0_i32_0 : i32, i32
  }
  func.func @transform_1(%arg0: i32) -> (i32, i32) {
    %c0_i32 = arith.constant 0 : i32
    %c0_i32_0 = arith.constant 0 : i32
    %c0_i32_1 = arith.constant 0 : i32
    return %c0_i32, %c0_i32_0 : i32, i32
  }
  func.func @transform_2(%arg0: i32) -> (i32, i32) {
    %c0_i32 = arith.constant 0 : i32
    %c0_i32_0 = arith.constant 0 : i32
    %c0_i32_1 = arith.constant 0 : i32
    return %c0_i32, %c0_i32_0 : i32, i32
  }
  func.func @transform_3(%arg0: i32) -> (i32, i32) {
    %c0_i32 = arith.constant 0 : i32
    %c0_i32_0 = arith.constant 0 : i32
    return %arg0, %c0_i32 : i32, i32
  }
  func.func @transform_4(%arg0: i32) -> (i32, i32) {
    %c0_i32 = arith.constant 0 : i32
    %c0_i32_0 = arith.constant 0 : i32
    %c0_i32_1 = arith.constant 0 : i32
    return %c0_i32, %c0_i32_0 : i32, i32
  }
}

</mosaic_0001>

<bundles_post_ra>
// kernel: tpu_custom_call.1
= control target key start
LH: loop header
LB: loop body
LE: loop exit
PB: predicated region body
PF: predicated region fallthrough
CT: control target
= control target key end

     0   :  { %9 = vsyncpa [#allocation5], 0  ;;  %s719_s0 = inlined_call_operand.vmem [shape: f32[8,32], index: 0, kind: input, shape index: {}]   ;;  %s720_s1 = inlined_call_operand.hbm [shape: f32[8,16], index: 1, kind: input, shape index: {}]   ;;  %s721_s2 = inlined_call_operand.vmem [shape: s32[1,8], index: 2, kind: input, shape index: {}]   ;;  %s722_s3 = inlined_call_operand.vmem [shape: s32[8,1], index: 3, kind: input, shape index: {}]   ;;  %s723_s4 = inlined_call_operand.hbm [shape: f32[1,1], index: 4, kind: output, shape index: {}]  }
   0x1   :  { %10 = vsyncpa [#allocation6], 0  ;;  %s642_s15 = smov [#allocation4]  }
   0x2   :  { %s19_s16 = sshll.u32 %s642_s15, 4  ;;  %s20_s16 = int_to_ptr.vmem [resolvable:$true] %s19_s16 }
   0x3   :  { %s606_s17 = scalar_lea.vmem %s20_s16, 128  ;;  %p611_p1 = scmp.lt.s32.totalorder %s20_s16, %s20_s16 }
   0x4   :  { %p607_p0 = scmp.ne.s32.totalorder %s20_s16, %s606_s17  ;;  %p612_p2 = scmp.lt.s32.totalorder %s606_s17, %s606_s17 }
   0x6   :  { %p613_p3 = por %p612_p2, %p611_p1 }
   0x8   :  { %p614_p4 = pnand %p613_p3, %p607_p0 }
   0xa   :  { %617 = shalt.err (!%p614_p4)
}
   0xb   :  { %22 = dma.hbm_to_vmem [thread:$0]  %s720_s1, 128, %s20_s16, [#allocation5]  }
   0xc   :  { %638 = dma.done.wait [#allocation5], 128  }
   0xd   :  { %639 = vsyncadd [#allocation5], 4294967168  ;;  %v643_v0 = vmov 0.0   ;;  %vm644_vm0 = vmmov 0   ;;  %vm41_vm1 = vcmask 261120   ;;  %v38_v1 = vld [vmem:[%s719_s0] sm:$0xff]  ;;  %v199_v33 = vlaneseq }
   0xe   :  { %546 = vmatprep.subr.mxu1 %v643_v0  ;;  %541 = vmatprep.subr.mxu0 %v643_v0  ;;  %v277_v2 = vld [vmem:[#allocation4] sm:$0xff]  ;;  %v122_v3 = vmul.f32 %v38_v1, %v38_v1  ;;  %v216_v4 = vsel %vm41_vm1, %v38_v1, 0.0  ;;  %vm280_vm2 = vcmask 130048   ;;  %v645_v10 = vmov 1.0   ;;  %s647_s11 = smov [#allocation7]  }
   0xf   :  { %548 = vmatprep.mubr.msk.f32.mxu1 %vm644_vm0, %v643_v0  ;;  %543 = vmatprep.mubr.msk.f32.mxu0 %vm644_vm0, %v643_v0  ;;  %v217_v5 = vrot.slane %v216_v4, 4  ;;  %v361_v7 = vmul.f32 %v277_v2, %v277_v2  ;;  %vm225_vm3 = vcmask 253952   ;;  %v458_v17 = vld [vmem:[%s722_s3] sm:$0xff]  ;;  %v646_v18 = vmov 0   ;;  %s514_s12 = sshll.u32 %s647_s11, 4  ;;  %s515_s12 = int_to_ptr.vmem [resolvable:$true] %s514_s12 }
  0x10   :  { %542 = vmatpush3.xpose.msk.msra.mxu0 %vm41_vm1, %v38_v1  ;;  %v206_v6 = vsel %vm41_vm1, %v122_v3, 0.0  ;;  %547 = vmatpush3.xpose.msk.msra.mxu1 %vm41_vm1, %v122_v3  ;;  %v200_v34 = vshrl.u32 %v199_v33, 7  ;;  %vm469_vm5 = vcmask 64512   ;;  %vm35_vm6 = vcmask 0   ;;  %s618_s13 = scalar_lea.vmem %s515_s12, 16  ;;  %s622_s14 = scalar_lea.vmem %s515_s12, 32 }
  0x11   :  { %551 = vmatprep.subr.mxu0 %v643_v0  ;;  %207 = vadd.xlane.f32.xlu0 %v206_v6  ;;  %v218_v8 = vadd.f32 %v217_v5, %v216_v4  ;;  %v358_v16 = vsel %vm280_vm2, %v361_v7, 0.0  ;;  %36 = vst.msk [vmem:[#allocation2] sm:$0x1] %vm35_vm6, %v643_v0  ;;  %37 = vst.msk [vmem:[#allocation3] sm:$0x1] %vm35_vm6, %v643_v0  ;;  %p619_p5 = scmp.ne.s32.totalorder %s515_s12, %s618_s13  ;;  %p623_p6 = scmp.lt.s32.totalorder %s515_s12, %s515_s12 }
  0x12   :  { %556 = vmatprep.subr.mxu1 %v643_v0  ;;  %120 = vadd.xlane.f32.xlu1 %v206_v6  ;;  %v201_v35 = vsub.s32 0, %v200_v34  ;;  %p624_p7 = scmp.lt.s32.totalorder %s622_s14, %s618_s13 }
  0x13   :  { %544 = vmatmul.mubr.msk.f32.vlgmr.msra.gmra.mxu0 %vm41_vm1, %v38_v1  ;;  %v219_v9 = vrot.slane %v218_v8, 2  ;;  %549 = vmatmul.mubr.msk.f32.vlgmr.msra.gmra.mxu1 %vm41_vm1, %v645_v10 }
  0x14   :  { %552 = vmatpush3.xpose.msk.msra.mxu0 %vm280_vm2, %v277_v2  ;;  %557 = vmatpush3.xpose.msk.msra.mxu1 %vm280_vm2, %v361_v7  ;;  %p625_p8 = por %p624_p7, %p623_p6 }
  0x15   :  { %558 = vmatprep.mubr.msk.f32.mxu1 %vm644_vm0, %v643_v0  ;;  %v220_v11 = vadd.f32 %v219_v9, %v218_v8  ;;  %553 = vmatprep.mubr.msk.f32.mxu0 %vm644_vm0, %v643_v0 }
  0x16   :  { %359 = vadd.xlane.f32.xlu1 %v358_v16  ;;  %577 = vset.pattern.permute.xlu0 %v646_v18  ;;  %p626_p9 = pnand %p625_p8, %p619_p5 }
  0x17   :  { %554 = vmatmul.mubr.msk.f32.vlgmr.msra.gmra.mxu0 %vm280_vm2, %v277_v2  ;;  %v221_v12 = vrot.slane %v220_v11, 1  ;;  %559 = vmatmul.mubr.msk.f32.vlgmr.msra.gmra.mxu1 %vm280_vm2, %v645_v10 }
  0x19   :  { %v222_v13 = vadd.f32 %v221_v12, %v220_v11 }
  0x1b   :  { %v224_v14 = vmul.f32 %v222_v13, %v222_v13 }
  0x1d   :  { %v226_v15 = vsel %vm225_vm3, %v224_v14, 0.0 }
  0x1e   :  { %227 = vadd.xlane.f32.xlu0 %v226_v15 }
  0x34   :  { %464 = vperm.xlu0 %577, %v458_v17  }
  0x9a   :  { %v208_v19 = vpop.xlane.xlu0 %207 }
  0x9b   :  { %v209_v20 = vrot.slane %v208_v19, 4  ;;  %v121_v36 = vpop.xlane.xlu1 %120 }
  0x9d   :  { %v210_v21 = vadd.f32 %v209_v20, %v208_v19 }
  0x9f   :  { %v211_v22 = vrot.slane %v210_v21, 2  ;;  %v360_v46 = vpop.xlane.xlu1 %359 }
  0xa1   :  { %v212_v23 = vadd.f32 %v211_v22, %v210_v21 }
  0xa3   :  { %v213_v24 = vrot.slane %v212_v23, 1 }
  0xa5   :  { %v214_v25 = vadd.f32 %v213_v24, %v212_v23 }
  0xa7   :  { %v228_v26 = vpop.xlane.xlu0 %227  ;;  %561 = vpush %v214_v25 }
  0xa8   :  { %v229_v27 = vrot.slane %v228_v26, 4 }
  0xaa   :  { %v230_v28 = vadd.f32 %v229_v27, %v228_v26  ;;  %v531_v27 = vld [vmem:[%s721_s2] ss:$0 sm:$0xff] }
  0xac   :  { %v231_v29 = vrot.slane %v230_v28, 2 }
  0xae   :  { %v232_v30 = vadd.f32 %v231_v29, %v230_v28 }
  0xaf   :  { %v465_v28 = vpop.permute.xlu0 %464 }
  0xb0   :  { %v233_v31 = vrot.slane %v232_v30, 1  ;;  %vm466_vm4 = vcmp.ne.s32.totalorder %v531_v27, %v465_v28 }
  0xb2   :  { %v234_v32 = vadd.f32 %v233_v31, %v232_v30 }
  0xb4   :  { %563 = vpush %v234_v32 }
  0xd3   :  { %v114_v37 = vpop.f32.mrf.mxu0  ;;  %v195_v38 = vpop.f32.mrf.mxu1 }
  0xd4   :  { %v202_v39 = vrot.slane %v195_v38, %v201_v35  ;;  %v204_v40 = vmul.f32 2.0, %v114_v37 }
  0xd5   :  { %v545_v41 = vpop.f32.mrf.mxu0  ;;  %v550_v42 = vpop.f32.mrf.mxu1 }
  0xd6   :  { %v203_v43 = vadd.f32 %v202_v39, %v121_v36 }
  0xd7   :  { %v353_v44 = vpop.f32.mrf.mxu0  ;;  %v433_v45 = vpop.f32.mrf.mxu1 }
  0xd8   :  { %v205_v47 = vsub.f32 %v203_v43, %v204_v40  ;;  %v440_v48 = vrot.slane %v433_v45, %v201_v35  ;;  %v442_v49 = vmul.f32 2.0, %v353_v44  ;;  %s562_s3 = spop %561  ;;  %v532_v35 = vsel %vm466_vm4, 1.0, %v643_v0 }
  0xd9   :  { %v555_v50 = vpop.f32.mrf.mxu0  ;;  %v560_v51 = vpop.f32.mrf.mxu1  ;;  %s223_s22 = smul.f32 16.0, %s562_s3  ;;  %v487_v36 = vsel %vm469_vm5, %v532_v35, 0.0 }
  0xda   :  { %v441_v52 = vadd.f32 %v440_v48, %v360_v46  ;;  %v467_v51 = vld [vmem:[#allocation2] sm:$0x1] }
  0xdc   :  { %v443_v53 = vsub.f32 %v441_v52, %v442_v49 }
  0xde   :  { %v444_v56 = vmul.f32 -2.0, %v443_v53  ;;  %v447_v57 = vmul.f32 -1.0, %v443_v53  ;;  %v451_v60 = vmul.f32 -0.5, %v443_v53  ;;  %v484_v53 = vld [vmem:[#allocation3] sm:$0x1] }
  0xe0   :  { %v445_v59 = vmul.f32 1.442695, %v444_v56  ;;  %v448_v62 = vmul.f32 1.442695, %v447_v57  ;;  %v452_v6 = vmul.f32 1.442695, %v451_v60 }
  0xe5   :  { %s564_s23 = spop %563 }
  0xe6   :  { %s236_s24 = smul.f32 2.0, %s564_s23 }
  0xe8   :  { %s237_s25 = ssub.f32 %s223_s22, %s236_s24 }
  0xea   :  { %s240_s26 = smul.f32 0.017857144, %s237_s25 }
  0xec   :  { %s243_s27 = smul.f32 0.25, %s240_s26 }
  0xee   :  { %v244_v54 = vstv %s243_s27 }
  0xef   :  { %578 = vrcp.f32 %v244_v54 }
  0xf0   :  { %580 = vpow2.f32 %v445_v59 }
  0xf1   :  { %582 = vpow2.f32 %v448_v62 }
  0xfc   :  { %v579_v55 = vpop.eup %578 }
  0xfd   :  { %565 = vpush %v579_v55  ;;  %v581_v14 = vpop.eup %580 }
  0xfe   :  { %v583_v15 = vpop.eup %582 }
  0xff   :  { %v450_v20 = vadd.f32 %v583_v15, %v581_v14 }
 0x12e   :  { %s566_s28 = spop %565 }
 0x12f   :  { %s247_s29 = smul.f32 -1.0, %s566_s28 }
 0x131   :  { %v248_v58 = vstv %s247_s29  ;;  %s252_s30 = smul.f32 0.5, %s247_s29 }
 0x132   :  { %v249_v61 = vmul.f32 %v248_v58, %v205_v47  ;;  %s258_s5 = smul.f32 0.25, %s247_s29 }
 0x133   :  { %v253_v63 = vstv %s252_s30  ;;  %s264_s6 = smul.f32 0.125, %s247_s29 }
 0x134   :  { %v250_v1 = vmul.f32 1.442695, %v249_v61  ;;  %v254_v2 = vmul.f32 %v253_v63, %v205_v47  ;;  %v259_v3 = vstv %s258_s5  ;;  %s270_s7 = smul.f32 0.0625, %s247_s29 }
 0x135   :  { %v260_v4 = vmul.f32 %v259_v3, %v205_v47  ;;  %v265_v5 = vstv %s264_s6 }
 0x136   :  { %v255_v7 = vmul.f32 1.442695, %v254_v2  ;;  %v266_v8 = vmul.f32 %v265_v5, %v205_v47  ;;  %v271_v9 = vstv %s270_s7  ;;  %584 = vpow2.f32 %v250_v1 }
 0x137   :  { %v261_v10 = vmul.f32 1.442695, %v260_v4  ;;  %v272_v11 = vmul.f32 %v271_v9, %v205_v47 }
 0x138   :  { %586 = vpow2.f32 %v255_v7  ;;  %v267_v12 = vmul.f32 1.442695, %v266_v8 }
 0x139   :  { %588 = vpow2.f32 %v452_v6  ;;  %v273_v13 = vmul.f32 1.442695, %v272_v11 }
 0x13a   :  { %590 = vpow2.f32 %v261_v10 }
 0x13b   :  { %592 = vpow2.f32 %v267_v12 }
 0x13c   :  { %594 = vpow2.f32 %v273_v13 }
 0x143   :  { %v585_v16 = vpop.eup %584 }
 0x145   :  { %v587_v17 = vpop.eup %586 }
 0x146   :  { %v589_v18 = vpop.eup %588  ;;  %v257_v19 = vadd.f32 %v587_v17, %v585_v16 }
 0x147   :  { %v591_v21 = vpop.eup %590  ;;  %v454_v25 = vadd.f32 %v589_v18, %v450_v20 }
 0x148   :  { %v263_v22 = vadd.f32 %v591_v21, %v257_v19  ;;  %v593_v23 = vpop.eup %592 }
 0x149   :  { %v595_v26 = vpop.eup %594  ;;  %v455_v31 = vmul.f32 0.33333334, %v454_v25 }
 0x14a   :  { %v269_v24 = vadd.f32 %v593_v23, %v263_v22 }
 0x14c   :  { %v275_v29 = vadd.f32 %v595_v26, %v269_v24 }
 0x14e   :  { %v276_v30 = vmul.f32 0.2, %v275_v29 }
 0x150   :  { %v456_v32 = vmul.f32 %v455_v31, %v276_v30 }
 0x152   :  { %v468_v33 = vsel %vm466_vm4, %v456_v32, 0.0 }
 0x153   :  { %v470_v34 = vsel %vm469_vm5, %v468_v33, 0.0 }
 0x154   :  { %471 = vadd.xlane.f32.xlu1 %v470_v34 }
 0x158   :  { %488 = vadd.xlane.f32.xlu1 %v487_v36 }
 0x1dd   :  { %v472_v37 = vpop.xlane.xlu1 %471 }
 0x1de   :  { %v473_v38 = vrot.slane %v472_v37, 4 }
 0x1e0   :  { %v474_v39 = vadd.f32 %v473_v38, %v472_v37 }
 0x1e1   :  { %v489_v40 = vpop.xlane.xlu1 %488 }
 0x1e2   :  { %v475_v41 = vrot.slane %v474_v39, 2  ;;  %v490_v42 = vrot.slane %v489_v40, 4 }
 0x1e4   :  { %v491_v43 = vadd.f32 %v490_v42, %v489_v40  ;;  %v476_v44 = vadd.f32 %v475_v41, %v474_v39 }
 0x1e6   :  { %v492_v45 = vrot.slane %v491_v43, 2  ;;  %v477_v46 = vrot.slane %v476_v44, 1 }
 0x1e8   :  { %v493_v47 = vadd.f32 %v492_v45, %v491_v43  ;;  %v478_v48 = vadd.f32 %v477_v46, %v476_v44 }
 0x1ea   :  { %567 = vpush %v478_v48  ;;  %v494_v49 = vrot.slane %v493_v47, 1 }
 0x1ec   :  { %v495_v50 = vadd.f32 %v494_v49, %v493_v47 }
 0x1ee   :  { %569 = vpush %v495_v50 }
 0x21b   :  { %s568_s2 = spop %567 }
 0x21c   :  { %v480_v52 = vstv %s568_s2 }
 0x21d   :  { %v481_v0 = vadd.f32 %v480_v52, %v467_v51 }
 0x21f   :  { %483 = vst.msk [vmem:[#allocation2] sm:$0x1] %vm35_vm6, %v481_v0  ;;  %s570_s10 = spop %569 }
 0x220   :  { %v497_v54 = vstv %s570_s10 }
 0x221   :  { %v498_v55 = vadd.f32 %v497_v54, %v484_v53 }
 0x223   :  { %499 = vst.msk [vmem:[#allocation3] sm:$0x1] %vm35_vm6, %v498_v55 }
 0x226   :  { %v503_v58 = vld [vmem:[#allocation2] sm:$0x1] }
 0x22a   :  { %v504_v56 = vld [vmem:[#allocation3] sm:$0x1] }
 0x22b   :  { %596 = vrcp.f32 %v504_v56 }
 0x238   :  { %v597_v57 = vpop.eup %596 }
 0x239   :  { %v506_v59 = vmul.f32 %v597_v57, %v503_v58 }
 0x23b   :  { %507 = vst.msk [vmem:[#allocation7] sm:$0x1] %vm35_vm6, %v506_v59 }
 0x23c   :  { %629 = shalt.err (!%p626_p9)
}
 0x23d   :  { %517 = dma.vmem_to_hbm [thread:$0]  %s515_s12, 16, %s723_s4, [#allocation6]  }
 0x23e   :  { %640 = dma.done.wait [#allocation6], 16  }
 0x23f   :  { %641 = vsyncadd [#allocation6], 4294967280 }
 0x240   :  { %521 = vsyncpa [#allocation5], 1 }
 0x241   :  { %522 = vsyncpa [#allocation6], 1 }

</bundles_post_ra>
